<compile_context>
chip_gen: v7x
topology: tpu7x:2x2x1
jax: 0.10.0
libtpu: 0.0.40
codegen_flags: <defaults>
</compile_context>

<pallas_src>
from functools import partial

import jax
import jax.numpy as jnp
from jax.experimental import pallas as pl
from jax.experimental.pallas import tpu as pltpu

LANES = 128                # vreg lane width; lane-dense last dim of the slab
DEFAULT_TILE_ROWS = 2048   # 2048 x 128 x 4 B = 1 MiB per f32 tile


def _copy_kernel(x_ref, o_ref):
    # Forward pass of OptimizeVertexColors: return the parameter unchanged.
    o_ref[...] = x_ref[...]


@partial(jax.jit, static_argnames=("tile_rows",))
def _materialize(weights: jax.Array, tile_rows: int = DEFAULT_TILE_ROWS) -> jax.Array:
    """Copy `weights` into a fresh buffer via a Pallas kernel (no pad/slice)."""
    orig_shape = weights.shape
    n = weights.size

    if n % LANES == 0:
        # Lane-dense view; contiguous reshape is a free bitcast under jit.
        rows, lanes = n // LANES, LANES
        x2d = weights.reshape(rows, lanes)
    else:
        # Copy the parameter in its native layout; the block's last dim equals
        # the full array dim, which is always a legal BlockSpec.
        x2d = weights if weights.ndim == 2 else weights.reshape(orig_shape[0], -1)
        rows, lanes = x2d.shape

    if rows <= tile_rows:
        tile = rows                    # single block == full extent: legal
        grid = (1,)
    else:
        tile = tile_rows               # multiple of 8/16/32 for any dtype
        grid = (pl.cdiv(rows, tile),)  # ragged last block masked by Pallas

    out2d = pl.pallas_call(
        _copy_kernel,
        out_shape=jax.ShapeDtypeStruct((rows, lanes), weights.dtype),
        grid=grid,
        in_specs=[pl.BlockSpec((tile, lanes), lambda i: (i, 0))],
        out_specs=pl.BlockSpec((tile, lanes), lambda i: (i, 0)),
        compiler_params=pltpu.CompilerParams(
            dimension_semantics=("parallel",),  # v7x: shard rows across 2 TCs
        ),
    )(x2d)

    return out2d.reshape(orig_shape)


def optimize_vertex_colors_forward(weights: jax.Array, *, materialize: bool = False,
                                   tile_rows: int = DEFAULT_TILE_ROWS) -> jax.Array:
    """Pallas equivalent of OptimizeVertexColors.forward() -> weights.

    Default: short-circuit the identity (zero HBM traffic, zero launch cost).
    materialize=True: produce a fresh copy of the parameter via the Pallas
    copy kernel.
    """
    if not materialize:
        return weights
    return _materialize(weights, tile_rows=tile_rows)


if __name__ == "__main__":
    key = jax.random.PRNGKey(0)
    k1, k2, k3 = jax.random.split(key, 3)

    # Realistic vertex-color parameter: V=1000 vertices, 3 RGB channels
    # (mirrors torch.rand(params_size)).
    params_size = (1000, 3)
    weights = jax.random.uniform(k1, params_size, dtype=jnp.float32)

    # 1) Default fast path: forward() is literally `return weights`.
    out_fast = jax.block_until_ready(optimize_vertex_colors_forward(weights))
    assert out_fast.shape == params_size
    assert out_fast.dtype == jnp.float32
    assert bool(jnp.array_equal(out_fast, weights)), "forward must return weights unchanged"

    # 2) Pallas copy, single-block native (V, C) path (n % 128 != 0).
    out_copy = jax.block_until_ready(
        optimize_vertex_colors_forward(weights, materialize=True))
    assert out_copy.shape == params_size
    assert out_copy.dtype == jnp.float32
    assert bool(jnp.array_equal(out_copy, weights))

    # 3) Pallas copy, lane-dense multi-block path (n % 128 == 0, 2 row tiles).
    w_dense = jax.random.uniform(k2, (4096, 4), dtype=jnp.float32)
    out_dense = jax.block_until_ready(
        optimize_vertex_colors_forward(w_dense, materialize=True, tile_rows=64))
    assert bool(jnp.array_equal(out_dense, w_dense))

    # 4) Pallas copy, ragged multi-block (V, C) path (ragged tail masked in-kernel).
    w_ragged = jax.random.uniform(k3, (2500, 3), dtype=jnp.float32)
    out_ragged = jax.block_until_ready(
        optimize_vertex_colors_forward(w_ragged, materialize=True, tile_rows=1024))
    assert bool(jnp.array_equal(out_ragged, w_ragged))

    print("KERNEL_OK")
</pallas_src>

<mosaic_0001>
module attributes {stable_mosaic.version = 11 : i64} {
  func.func @_copy_kernel(%arg0: i32, %arg1: memref<1000x3xf32, #tpu.memory_space<vmem>>, %arg2: memref<1000x3xf32, #tpu.memory_space<vmem>>) attributes {dimension_semantics = [#tpu.dimension_semantics<parallel>], iteration_bounds = array<i64: 1>, scalar_prefetch = 0 : i64, scratch_operands = 0 : i64, tpu.core_type = #tpu.core_type<tc>, window_params = [{transform_indices = @transform_0, window_bounds = array<i64: 1000, 3>}, {transform_indices = @transform_1, window_bounds = array<i64: 1000, 3>}]} {
    %c0 = arith.constant 0 : index
    %c0_0 = arith.constant 0 : index
    %0 = vector.load %arg1[%c0, %c0_0] : memref<1000x3xf32, #tpu.memory_space<vmem>>, vector<1000x3xf32>
    %c0_1 = arith.constant 0 : index
    %c0_2 = arith.constant 0 : index
    %1 = vector.load %arg2[%c0_1, %c0_2] : memref<1000x3xf32, #tpu.memory_space<vmem>>, vector<1000x3xf32>
    tpu.vector_store %arg2[%c0_1, %c0_2], %0 {strides = array<i32>} : memref<1000x3xf32, #tpu.memory_space<vmem>>, vector<1000x3xf32>,
    return
  }
  func.func @transform_0(%arg0: i32) -> (i32, i32) {
    %c0_i32 = arith.constant 0 : i32
    %c0_i32_0 = arith.constant 0 : i32
    return %arg0, %c0_i32 : i32, i32
  }
  func.func @transform_1(%arg0: i32) -> (i32, i32) {
    %c0_i32 = arith.constant 0 : i32
    %c0_i32_0 = arith.constant 0 : i32
    return %arg0, %c0_i32 : i32, i32
  }
}

</mosaic_0001>

<bundles_post_ra>
// kernel: _materialize.1
= control target key start
LH: loop header
LB: loop body
LE: loop exit
PB: predicated region body
PF: predicated region fallthrough
CT: control target
= control target key end

     0   :  { %vm133_vm0 = vcmask 23552   ;;  %s1148_s0 = inlined_call_operand.vmem [shape: f32[1000,3], index: 0, kind: input, shape index: {}]   ;;  %s1149_s1 = inlined_call_operand.vmem [shape: f32[1000,3], index: 1, kind: output, shape index: {}]  }
   0x1   :  { %v8_v0 = vld [vmem:[%s1148_s0] sm:$0xff]  ;;  %v9_v1 = vld [vmem:[%s1148_s0 + $0x8] sm:$0xff]  ;;  %v10_v2 = vld [vmem:[%s1148_s0 + $0x10] sm:$0xff] }
   0x2   :  { %134 = vst.msk [vmem:[%s1149_s1] sm:$0xff] %vm133_vm0, %v8_v0  ;;  %135 = vst.msk [vmem:[%s1149_s1 + $0x8] sm:$0xff] %vm133_vm0, %v9_v1  ;;  %v11_v3 = vld [vmem:[%s1148_s0 + $0x18] sm:$0xff]  ;;  %v12_v4 = vld [vmem:[%s1148_s0 + $0x20] sm:$0xff] }
   0x3   :  { %136 = vst.msk [vmem:[%s1149_s1 + $0x10] sm:$0xff] %vm133_vm0, %v10_v2  ;;  %v13_v5 = vld [vmem:[%s1148_s0 + $0x28] sm:$0xff]  ;;  %137 = vst.msk [vmem:[%s1149_s1 + $0x18] sm:$0xff] %vm133_vm0, %v11_v3  ;;  %v14_v6 = vld [vmem:[%s1148_s0 + $0x30] sm:$0xff] }
   0x4   :  { %138 = vst.msk [vmem:[%s1149_s1 + $0x20] sm:$0xff] %vm133_vm0, %v12_v4  ;;  %139 = vst.msk [vmem:[%s1149_s1 + $0x28] sm:$0xff] %vm133_vm0, %v13_v5  ;;  %v15_v7 = vld [vmem:[%s1148_s0 + $0x38] sm:$0xff]  ;;  %v16_v8 = vld [vmem:[%s1148_s0 + $0x40] sm:$0xff] }
   0x5   :  { %140 = vst.msk [vmem:[%s1149_s1 + $0x30] sm:$0xff] %vm133_vm0, %v14_v6  ;;  %141 = vst.msk [vmem:[%s1149_s1 + $0x38] sm:$0xff] %vm133_vm0, %v15_v7  ;;  %v17_v9 = vld [vmem:[%s1148_s0 + $0x48] sm:$0xff]  ;;  %v18_v10 = vld [vmem:[%s1148_s0 + $0x50] sm:$0xff] }
   0x6   :  { %142 = vst.msk [vmem:[%s1149_s1 + $0x40] sm:$0xff] %vm133_vm0, %v16_v8  ;;  %v19_v11 = vld [vmem:[%s1148_s0 + $0x58] sm:$0xff]  ;;  %143 = vst.msk [vmem:[%s1149_s1 + $0x48] sm:$0xff] %vm133_vm0, %v17_v9  ;;  %v20_v12 = vld [vmem:[%s1148_s0 + $0x60] sm:$0xff] }
   0x7   :  { %144 = vst.msk [vmem:[%s1149_s1 + $0x50] sm:$0xff] %vm133_vm0, %v18_v10  ;;  %145 = vst.msk [vmem:[%s1149_s1 + $0x58] sm:$0xff] %vm133_vm0, %v19_v11  ;;  %v21_v13 = vld [vmem:[%s1148_s0 + $0x68] sm:$0xff]  ;;  %v22_v14 = vld [vmem:[%s1148_s0 + $0x70] sm:$0xff] }
   0x8   :  { %146 = vst.msk [vmem:[%s1149_s1 + $0x60] sm:$0xff] %vm133_vm0, %v20_v12  ;;  %147 = vst.msk [vmem:[%s1149_s1 + $0x68] sm:$0xff] %vm133_vm0, %v21_v13  ;;  %v23_v15 = vld [vmem:[%s1148_s0 + $0x78] sm:$0xff]  ;;  %v24_v16 = vld [vmem:[%s1148_s0 + $0x80] sm:$0xff] }
   0x9   :  { %148 = vst.msk [vmem:[%s1149_s1 + $0x70] sm:$0xff] %vm133_vm0, %v22_v14  ;;  %v25_v17 = vld [vmem:[%s1148_s0 + $0x88] sm:$0xff]  ;;  %149 = vst.msk [vmem:[%s1149_s1 + $0x78] sm:$0xff] %vm133_vm0, %v23_v15  ;;  %v26_v18 = vld [vmem:[%s1148_s0 + $0x90] sm:$0xff] }
   0xa   :  { %150 = vst.msk [vmem:[%s1149_s1 + $0x80] sm:$0xff] %vm133_vm0, %v24_v16  ;;  %151 = vst.msk [vmem:[%s1149_s1 + $0x88] sm:$0xff] %vm133_vm0, %v25_v17  ;;  %v27_v19 = vld [vmem:[%s1148_s0 + $0x98] sm:$0xff]  ;;  %v28_v20 = vld [vmem:[%s1148_s0 + $0xa0] sm:$0xff] }
   0xb   :  { %152 = vst.msk [vmem:[%s1149_s1 + $0x90] sm:$0xff] %vm133_vm0, %v26_v18  ;;  %153 = vst.msk [vmem:[%s1149_s1 + $0x98] sm:$0xff] %vm133_vm0, %v27_v19  ;;  %v29_v21 = vld [vmem:[%s1148_s0 + $0xa8] sm:$0xff]  ;;  %v30_v22 = vld [vmem:[%s1148_s0 + $0xb0] sm:$0xff] }
   0xc   :  { %154 = vst.msk [vmem:[%s1149_s1 + $0xa0] sm:$0xff] %vm133_vm0, %v28_v20  ;;  %v31_v23 = vld [vmem:[%s1148_s0 + $0xb8] sm:$0xff]  ;;  %155 = vst.msk [vmem:[%s1149_s1 + $0xa8] sm:$0xff] %vm133_vm0, %v29_v21  ;;  %v32_v24 = vld [vmem:[%s1148_s0 + $0xc0] sm:$0xff] }
   0xd   :  { %156 = vst.msk [vmem:[%s1149_s1 + $0xb0] sm:$0xff] %vm133_vm0, %v30_v22  ;;  %157 = vst.msk [vmem:[%s1149_s1 + $0xb8] sm:$0xff] %vm133_vm0, %v31_v23  ;;  %v33_v25 = vld [vmem:[%s1148_s0 + $0xc8] sm:$0xff]  ;;  %v34_v26 = vld [vmem:[%s1148_s0 + $0xd0] sm:$0xff] }
   0xe   :  { %158 = vst.msk [vmem:[%s1149_s1 + $0xc0] sm:$0xff] %vm133_vm0, %v32_v24  ;;  %159 = vst.msk [vmem:[%s1149_s1 + $0xc8] sm:$0xff] %vm133_vm0, %v33_v25  ;;  %v35_v27 = vld [vmem:[%s1148_s0 + $0xd8] sm:$0xff]  ;;  %v36_v28 = vld [vmem:[%s1148_s0 + $0xe0] sm:$0xff] }
   0xf   :  { %160 = vst.msk [vmem:[%s1149_s1 + $0xd0] sm:$0xff] %vm133_vm0, %v34_v26  ;;  %v37_v29 = vld [vmem:[%s1148_s0 + $0xe8] sm:$0xff]  ;;  %161 = vst.msk [vmem:[%s1149_s1 + $0xd8] sm:$0xff] %vm133_vm0, %v35_v27  ;;  %v38_v30 = vld [vmem:[%s1148_s0 + $0xf0] sm:$0xff] }
  0x10   :  { %162 = vst.msk [vmem:[%s1149_s1 + $0xe0] sm:$0xff] %vm133_vm0, %v36_v28  ;;  %163 = vst.msk [vmem:[%s1149_s1 + $0xe8] sm:$0xff] %vm133_vm0, %v37_v29  ;;  %v39_v31 = vld [vmem:[%s1148_s0 + $0xf8] sm:$0xff]  ;;  %v40_v32 = vld [vmem:[%s1148_s0 + $0x100] sm:$0xff] }
  0x11   :  { %164 = vst.msk [vmem:[%s1149_s1 + $0xf0] sm:$0xff] %vm133_vm0, %v38_v30  ;;  %165 = vst.msk [vmem:[%s1149_s1 + $0xf8] sm:$0xff] %vm133_vm0, %v39_v31  ;;  %v41_v33 = vld [vmem:[%s1148_s0 + $0x108] sm:$0xff]  ;;  %v42_v34 = vld [vmem:[%s1148_s0 + $0x110] sm:$0xff] }
  0x12   :  { %166 = vst.msk [vmem:[%s1149_s1 + $0x100] sm:$0xff] %vm133_vm0, %v40_v32  ;;  %v43_v35 = vld [vmem:[%s1148_s0 + $0x118] sm:$0xff]  ;;  %167 = vst.msk [vmem:[%s1149_s1 + $0x108] sm:$0xff] %vm133_vm0, %v41_v33  ;;  %v44_v36 = vld [vmem:[%s1148_s0 + $0x120] sm:$0xff] }
  0x13   :  { %168 = vst.msk [vmem:[%s1149_s1 + $0x110] sm:$0xff] %vm133_vm0, %v42_v34  ;;  %169 = vst.msk [vmem:[%s1149_s1 + $0x118] sm:$0xff] %vm133_vm0, %v43_v35  ;;  %v45_v37 = vld [vmem:[%s1148_s0 + $0x128] sm:$0xff]  ;;  %v46_v38 = vld [vmem:[%s1148_s0 + $0x130] sm:$0xff] }
  0x14   :  { %170 = vst.msk [vmem:[%s1149_s1 + $0x120] sm:$0xff] %vm133_vm0, %v44_v36  ;;  %171 = vst.msk [vmem:[%s1149_s1 + $0x128] sm:$0xff] %vm133_vm0, %v45_v37  ;;  %v47_v39 = vld [vmem:[%s1148_s0 + $0x138] sm:$0xff]  ;;  %v48_v40 = vld [vmem:[%s1148_s0 + $0x140] sm:$0xff] }
  0x15   :  { %172 = vst.msk [vmem:[%s1149_s1 + $0x130] sm:$0xff] %vm133_vm0, %v46_v38  ;;  %v49_v41 = vld [vmem:[%s1148_s0 + $0x148] sm:$0xff]  ;;  %173 = vst.msk [vmem:[%s1149_s1 + $0x138] sm:$0xff] %vm133_vm0, %v47_v39  ;;  %v50_v42 = vld [vmem:[%s1148_s0 + $0x150] sm:$0xff] }
  0x16   :  { %174 = vst.msk [vmem:[%s1149_s1 + $0x140] sm:$0xff] %vm133_vm0, %v48_v40  ;;  %175 = vst.msk [vmem:[%s1149_s1 + $0x148] sm:$0xff] %vm133_vm0, %v49_v41  ;;  %v51_v43 = vld [vmem:[%s1148_s0 + $0x158] sm:$0xff]  ;;  %v52_v44 = vld [vmem:[%s1148_s0 + $0x160] sm:$0xff] }
  0x17   :  { %176 = vst.msk [vmem:[%s1149_s1 + $0x150] sm:$0xff] %vm133_vm0, %v50_v42  ;;  %177 = vst.msk [vmem:[%s1149_s1 + $0x158] sm:$0xff] %vm133_vm0, %v51_v43  ;;  %v53_v45 = vld [vmem:[%s1148_s0 + $0x168] sm:$0xff]  ;;  %v54_v46 = vld [vmem:[%s1148_s0 + $0x170] sm:$0xff] }
  0x18   :  { %178 = vst.msk [vmem:[%s1149_s1 + $0x160] sm:$0xff] %vm133_vm0, %v52_v44  ;;  %v55_v47 = vld [vmem:[%s1148_s0 + $0x178] sm:$0xff]  ;;  %179 = vst.msk [vmem:[%s1149_s1 + $0x168] sm:$0xff] %vm133_vm0, %v53_v45  ;;  %v56_v48 = vld [vmem:[%s1148_s0 + $0x180] sm:$0xff] }
  0x19   :  { %180 = vst.msk [vmem:[%s1149_s1 + $0x170] sm:$0xff] %vm133_vm0, %v54_v46  ;;  %181 = vst.msk [vmem:[%s1149_s1 + $0x178] sm:$0xff] %vm133_vm0, %v55_v47  ;;  %v57_v49 = vld [vmem:[%s1148_s0 + $0x188] sm:$0xff]  ;;  %v58_v50 = vld [vmem:[%s1148_s0 + $0x190] sm:$0xff] }
  0x1a   :  { %182 = vst.msk [vmem:[%s1149_s1 + $0x180] sm:$0xff] %vm133_vm0, %v56_v48  ;;  %183 = vst.msk [vmem:[%s1149_s1 + $0x188] sm:$0xff] %vm133_vm0, %v57_v49  ;;  %v59_v51 = vld [vmem:[%s1148_s0 + $0x198] sm:$0xff]  ;;  %v60_v52 = vld [vmem:[%s1148_s0 + $0x1a0] sm:$0xff] }
  0x1b   :  { %184 = vst.msk [vmem:[%s1149_s1 + $0x190] sm:$0xff] %vm133_vm0, %v58_v50  ;;  %v61_v53 = vld [vmem:[%s1148_s0 + $0x1a8] sm:$0xff]  ;;  %185 = vst.msk [vmem:[%s1149_s1 + $0x198] sm:$0xff] %vm133_vm0, %v59_v51  ;;  %v62_v54 = vld [vmem:[%s1148_s0 + $0x1b0] sm:$0xff] }
  0x1c   :  { %186 = vst.msk [vmem:[%s1149_s1 + $0x1a0] sm:$0xff] %vm133_vm0, %v60_v52  ;;  %187 = vst.msk [vmem:[%s1149_s1 + $0x1a8] sm:$0xff] %vm133_vm0, %v61_v53  ;;  %v63_v55 = vld [vmem:[%s1148_s0 + $0x1b8] sm:$0xff]  ;;  %v64_v56 = vld [vmem:[%s1148_s0 + $0x1c0] sm:$0xff] }
  0x1d   :  { %188 = vst.msk [vmem:[%s1149_s1 + $0x1b0] sm:$0xff] %vm133_vm0, %v62_v54  ;;  %189 = vst.msk [vmem:[%s1149_s1 + $0x1b8] sm:$0xff] %vm133_vm0, %v63_v55  ;;  %v65_v57 = vld [vmem:[%s1148_s0 + $0x1c8] sm:$0xff]  ;;  %v66_v58 = vld [vmem:[%s1148_s0 + $0x1d0] sm:$0xff] }
  0x1e   :  { %190 = vst.msk [vmem:[%s1149_s1 + $0x1c0] sm:$0xff] %vm133_vm0, %v64_v56  ;;  %v67_v59 = vld [vmem:[%s1148_s0 + $0x1d8] sm:$0xff]  ;;  %191 = vst.msk [vmem:[%s1149_s1 + $0x1c8] sm:$0xff] %vm133_vm0, %v65_v57  ;;  %v68_v60 = vld [vmem:[%s1148_s0 + $0x1e0] sm:$0xff] }
  0x1f   :  { %192 = vst.msk [vmem:[%s1149_s1 + $0x1d0] sm:$0xff] %vm133_vm0, %v66_v58  ;;  %193 = vst.msk [vmem:[%s1149_s1 + $0x1d8] sm:$0xff] %vm133_vm0, %v67_v59  ;;  %v69_v61 = vld [vmem:[%s1148_s0 + $0x1e8] sm:$0xff]  ;;  %v70_v62 = vld [vmem:[%s1148_s0 + $0x1f0] sm:$0xff] }
  0x20   :  { %194 = vst.msk [vmem:[%s1149_s1 + $0x1e0] sm:$0xff] %vm133_vm0, %v68_v60  ;;  %195 = vst.msk [vmem:[%s1149_s1 + $0x1e8] sm:$0xff] %vm133_vm0, %v69_v61  ;;  %v71_v63 = vld [vmem:[%s1148_s0 + $0x1f8] sm:$0xff]  ;;  %v72_v0 = vld [vmem:[%s1148_s0 + $0x200] sm:$0xff] }
  0x21   :  { %196 = vst.msk [vmem:[%s1149_s1 + $0x1f0] sm:$0xff] %vm133_vm0, %v70_v62  ;;  %v73_v1 = vld [vmem:[%s1148_s0 + $0x208] sm:$0xff]  ;;  %197 = vst.msk [vmem:[%s1149_s1 + $0x1f8] sm:$0xff] %vm133_vm0, %v71_v63  ;;  %v74_v2 = vld [vmem:[%s1148_s0 + $0x210] sm:$0xff] }
  0x22   :  { %198 = vst.msk [vmem:[%s1149_s1 + $0x200] sm:$0xff] %vm133_vm0, %v72_v0  ;;  %199 = vst.msk [vmem:[%s1149_s1 + $0x208] sm:$0xff] %vm133_vm0, %v73_v1  ;;  %v75_v3 = vld [vmem:[%s1148_s0 + $0x218] sm:$0xff]  ;;  %v76_v4 = vld [vmem:[%s1148_s0 + $0x220] sm:$0xff] }
  0x23   :  { %200 = vst.msk [vmem:[%s1149_s1 + $0x210] sm:$0xff] %vm133_vm0, %v74_v2  ;;  %201 = vst.msk [vmem:[%s1149_s1 + $0x218] sm:$0xff] %vm133_vm0, %v75_v3  ;;  %v77_v5 = vld [vmem:[%s1148_s0 + $0x228] sm:$0xff]  ;;  %v78_v6 = vld [vmem:[%s1148_s0 + $0x230] sm:$0xff] }
  0x24   :  { %202 = vst.msk [vmem:[%s1149_s1 + $0x220] sm:$0xff] %vm133_vm0, %v76_v4  ;;  %v79_v7 = vld [vmem:[%s1148_s0 + $0x238] sm:$0xff]  ;;  %203 = vst.msk [vmem:[%s1149_s1 + $0x228] sm:$0xff] %vm133_vm0, %v77_v5  ;;  %v80_v8 = vld [vmem:[%s1148_s0 + $0x240] sm:$0xff] }
  0x25   :  { %204 = vst.msk [vmem:[%s1149_s1 + $0x230] sm:$0xff] %vm133_vm0, %v78_v6  ;;  %205 = vst.msk [vmem:[%s1149_s1 + $0x238] sm:$0xff] %vm133_vm0, %v79_v7  ;;  %v81_v9 = vld [vmem:[%s1148_s0 + $0x248] sm:$0xff]  ;;  %v82_v10 = vld [vmem:[%s1148_s0 + $0x250] sm:$0xff] }
  0x26   :  { %206 = vst.msk [vmem:[%s1149_s1 + $0x240] sm:$0xff] %vm133_vm0, %v80_v8  ;;  %207 = vst.msk [vmem:[%s1149_s1 + $0x248] sm:$0xff] %vm133_vm0, %v81_v9  ;;  %v83_v11 = vld [vmem:[%s1148_s0 + $0x258] sm:$0xff]  ;;  %v84_v12 = vld [vmem:[%s1148_s0 + $0x260] sm:$0xff] }
  0x27   :  { %208 = vst.msk [vmem:[%s1149_s1 + $0x250] sm:$0xff] %vm133_vm0, %v82_v10  ;;  %v85_v13 = vld [vmem:[%s1148_s0 + $0x268] sm:$0xff]  ;;  %209 = vst.msk [vmem:[%s1149_s1 + $0x258] sm:$0xff] %vm133_vm0, %v83_v11  ;;  %v86_v14 = vld [vmem:[%s1148_s0 + $0x270] sm:$0xff] }
  0x28   :  { %210 = vst.msk [vmem:[%s1149_s1 + $0x260] sm:$0xff] %vm133_vm0, %v84_v12  ;;  %211 = vst.msk [vmem:[%s1149_s1 + $0x268] sm:$0xff] %vm133_vm0, %v85_v13  ;;  %v87_v15 = vld [vmem:[%s1148_s0 + $0x278] sm:$0xff]  ;;  %v88_v16 = vld [vmem:[%s1148_s0 + $0x280] sm:$0xff] }
  0x29   :  { %212 = vst.msk [vmem:[%s1149_s1 + $0x270] sm:$0xff] %vm133_vm0, %v86_v14  ;;  %213 = vst.msk [vmem:[%s1149_s1 + $0x278] sm:$0xff] %vm133_vm0, %v87_v15  ;;  %v89_v17 = vld [vmem:[%s1148_s0 + $0x288] sm:$0xff]  ;;  %v90_v18 = vld [vmem:[%s1148_s0 + $0x290] sm:$0xff] }
  0x2a   :  { %214 = vst.msk [vmem:[%s1149_s1 + $0x280] sm:$0xff] %vm133_vm0, %v88_v16  ;;  %v91_v19 = vld [vmem:[%s1148_s0 + $0x298] sm:$0xff]  ;;  %215 = vst.msk [vmem:[%s1149_s1 + $0x288] sm:$0xff] %vm133_vm0, %v89_v17  ;;  %v92_v20 = vld [vmem:[%s1148_s0 + $0x2a0] sm:$0xff] }
  0x2b   :  { %216 = vst.msk [vmem:[%s1149_s1 + $0x290] sm:$0xff] %vm133_vm0, %v90_v18  ;;  %217 = vst.msk [vmem:[%s1149_s1 + $0x298] sm:$0xff] %vm133_vm0, %v91_v19  ;;  %v93_v21 = vld [vmem:[%s1148_s0 + $0x2a8] sm:$0xff]  ;;  %v94_v22 = vld [vmem:[%s1148_s0 + $0x2b0] sm:$0xff] }
  0x2c   :  { %218 = vst.msk [vmem:[%s1149_s1 + $0x2a0] sm:$0xff] %vm133_vm0, %v92_v20  ;;  %219 = vst.msk [vmem:[%s1149_s1 + $0x2a8] sm:$0xff] %vm133_vm0, %v93_v21  ;;  %v95_v23 = vld [vmem:[%s1148_s0 + $0x2b8] sm:$0xff]  ;;  %v96_v24 = vld [vmem:[%s1148_s0 + $0x2c0] sm:$0xff] }
  0x2d   :  { %220 = vst.msk [vmem:[%s1149_s1 + $0x2b0] sm:$0xff] %vm133_vm0, %v94_v22  ;;  %v97_v25 = vld [vmem:[%s1148_s0 + $0x2c8] sm:$0xff]  ;;  %221 = vst.msk [vmem:[%s1149_s1 + $0x2b8] sm:$0xff] %vm133_vm0, %v95_v23  ;;  %v98_v26 = vld [vmem:[%s1148_s0 + $0x2d0] sm:$0xff] }
  0x2e   :  { %222 = vst.msk [vmem:[%s1149_s1 + $0x2c0] sm:$0xff] %vm133_vm0, %v96_v24  ;;  %223 = vst.msk [vmem:[%s1149_s1 + $0x2c8] sm:$0xff] %vm133_vm0, %v97_v25  ;;  %v99_v27 = vld [vmem:[%s1148_s0 + $0x2d8] sm:$0xff]  ;;  %v100_v28 = vld [vmem:[%s1148_s0 + $0x2e0] sm:$0xff] }
  0x2f   :  { %224 = vst.msk [vmem:[%s1149_s1 + $0x2d0] sm:$0xff] %vm133_vm0, %v98_v26  ;;  %225 = vst.msk [vmem:[%s1149_s1 + $0x2d8] sm:$0xff] %vm133_vm0, %v99_v27  ;;  %v101_v29 = vld [vmem:[%s1148_s0 + $0x2e8] sm:$0xff]  ;;  %v102_v30 = vld [vmem:[%s1148_s0 + $0x2f0] sm:$0xff] }
  0x30   :  { %226 = vst.msk [vmem:[%s1149_s1 + $0x2e0] sm:$0xff] %vm133_vm0, %v100_v28  ;;  %v103_v31 = vld [vmem:[%s1148_s0 + $0x2f8] sm:$0xff]  ;;  %227 = vst.msk [vmem:[%s1149_s1 + $0x2e8] sm:$0xff] %vm133_vm0, %v101_v29  ;;  %v104_v32 = vld [vmem:[%s1148_s0 + $0x300] sm:$0xff] }
  0x31   :  { %228 = vst.msk [vmem:[%s1149_s1 + $0x2f0] sm:$0xff] %vm133_vm0, %v102_v30  ;;  %229 = vst.msk [vmem:[%s1149_s1 + $0x2f8] sm:$0xff] %vm133_vm0, %v103_v31  ;;  %v105_v33 = vld [vmem:[%s1148_s0 + $0x308] sm:$0xff]  ;;  %v106_v34 = vld [vmem:[%s1148_s0 + $0x310] sm:$0xff] }
  0x32   :  { %230 = vst.msk [vmem:[%s1149_s1 + $0x300] sm:$0xff] %vm133_vm0, %v104_v32  ;;  %231 = vst.msk [vmem:[%s1149_s1 + $0x308] sm:$0xff] %vm133_vm0, %v105_v33  ;;  %v107_v35 = vld [vmem:[%s1148_s0 + $0x318] sm:$0xff]  ;;  %v108_v36 = vld [vmem:[%s1148_s0 + $0x320] sm:$0xff] }
  0x33   :  { %232 = vst.msk [vmem:[%s1149_s1 + $0x310] sm:$0xff] %vm133_vm0, %v106_v34  ;;  %v109_v37 = vld [vmem:[%s1148_s0 + $0x328] sm:$0xff]  ;;  %233 = vst.msk [vmem:[%s1149_s1 + $0x318] sm:$0xff] %vm133_vm0, %v107_v35  ;;  %v110_v38 = vld [vmem:[%s1148_s0 + $0x330] sm:$0xff] }
  0x34   :  { %234 = vst.msk [vmem:[%s1149_s1 + $0x320] sm:$0xff] %vm133_vm0, %v108_v36  ;;  %235 = vst.msk [vmem:[%s1149_s1 + $0x328] sm:$0xff] %vm133_vm0, %v109_v37  ;;  %v111_v39 = vld [vmem:[%s1148_s0 + $0x338] sm:$0xff]  ;;  %v112_v40 = vld [vmem:[%s1148_s0 + $0x340] sm:$0xff] }
  0x35   :  { %236 = vst.msk [vmem:[%s1149_s1 + $0x330] sm:$0xff] %vm133_vm0, %v110_v38  ;;  %237 = vst.msk [vmem:[%s1149_s1 + $0x338] sm:$0xff] %vm133_vm0, %v111_v39  ;;  %v113_v41 = vld [vmem:[%s1148_s0 + $0x348] sm:$0xff]  ;;  %v114_v42 = vld [vmem:[%s1148_s0 + $0x350] sm:$0xff] }
  0x36   :  { %238 = vst.msk [vmem:[%s1149_s1 + $0x340] sm:$0xff] %vm133_vm0, %v112_v40  ;;  %v115_v43 = vld [vmem:[%s1148_s0 + $0x358] sm:$0xff]  ;;  %239 = vst.msk [vmem:[%s1149_s1 + $0x348] sm:$0xff] %vm133_vm0, %v113_v41  ;;  %v116_v44 = vld [vmem:[%s1148_s0 + $0x360] sm:$0xff] }
  0x37   :  { %240 = vst.msk [vmem:[%s1149_s1 + $0x350] sm:$0xff] %vm133_vm0, %v114_v42  ;;  %241 = vst.msk [vmem:[%s1149_s1 + $0x358] sm:$0xff] %vm133_vm0, %v115_v43  ;;  %v117_v45 = vld [vmem:[%s1148_s0 + $0x368] sm:$0xff]  ;;  %v118_v46 = vld [vmem:[%s1148_s0 + $0x370] sm:$0xff] }
  0x38   :  { %242 = vst.msk [vmem:[%s1149_s1 + $0x360] sm:$0xff] %vm133_vm0, %v116_v44  ;;  %243 = vst.msk [vmem:[%s1149_s1 + $0x368] sm:$0xff] %vm133_vm0, %v117_v45  ;;  %v119_v47 = vld [vmem:[%s1148_s0 + $0x378] sm:$0xff]  ;;  %v120_v48 = vld [vmem:[%s1148_s0 + $0x380] sm:$0xff] }
  0x39   :  { %244 = vst.msk [vmem:[%s1149_s1 + $0x370] sm:$0xff] %vm133_vm0, %v118_v46  ;;  %v121_v49 = vld [vmem:[%s1148_s0 + $0x388] sm:$0xff]  ;;  %245 = vst.msk [vmem:[%s1149_s1 + $0x378] sm:$0xff] %vm133_vm0, %v119_v47  ;;  %v122_v50 = vld [vmem:[%s1148_s0 + $0x390] sm:$0xff] }
  0x3a   :  { %246 = vst.msk [vmem:[%s1149_s1 + $0x380] sm:$0xff] %vm133_vm0, %v120_v48  ;;  %247 = vst.msk [vmem:[%s1149_s1 + $0x388] sm:$0xff] %vm133_vm0, %v121_v49  ;;  %v123_v51 = vld [vmem:[%s1148_s0 + $0x398] sm:$0xff]  ;;  %v124_v52 = vld [vmem:[%s1148_s0 + $0x3a0] sm:$0xff] }
  0x3b   :  { %248 = vst.msk [vmem:[%s1149_s1 + $0x390] sm:$0xff] %vm133_vm0, %v122_v50  ;;  %249 = vst.msk [vmem:[%s1149_s1 + $0x398] sm:$0xff] %vm133_vm0, %v123_v51  ;;  %v125_v53 = vld [vmem:[%s1148_s0 + $0x3a8] sm:$0xff]  ;;  %v126_v54 = vld [vmem:[%s1148_s0 + $0x3b0] sm:$0xff] }
  0x3c   :  { %250 = vst.msk [vmem:[%s1149_s1 + $0x3a0] sm:$0xff] %vm133_vm0, %v124_v52  ;;  %v127_v55 = vld [vmem:[%s1148_s0 + $0x3b8] sm:$0xff]  ;;  %251 = vst.msk [vmem:[%s1149_s1 + $0x3a8] sm:$0xff] %vm133_vm0, %v125_v53  ;;  %v128_v56 = vld [vmem:[%s1148_s0 + $0x3c0] sm:$0xff] }
  0x3d   :  { %252 = vst.msk [vmem:[%s1149_s1 + $0x3b0] sm:$0xff] %vm133_vm0, %v126_v54  ;;  %253 = vst.msk [vmem:[%s1149_s1 + $0x3b8] sm:$0xff] %vm133_vm0, %v127_v55  ;;  %v129_v57 = vld [vmem:[%s1148_s0 + $0x3c8] sm:$0xff]  ;;  %v130_v58 = vld [vmem:[%s1148_s0 + $0x3d0] sm:$0xff] }
  0x3e   :  { %254 = vst.msk [vmem:[%s1149_s1 + $0x3c0] sm:$0xff] %vm133_vm0, %v128_v56  ;;  %255 = vst.msk [vmem:[%s1149_s1 + $0x3c8] sm:$0xff] %vm133_vm0, %v129_v57  ;;  %v131_v59 = vld [vmem:[%s1148_s0 + $0x3d8] sm:$0xff]  ;;  %v132_v60 = vld [vmem:[%s1148_s0 + $0x3e0] sm:$0xff] }
  0x3f   :  { %256 = vst.msk [vmem:[%s1149_s1 + $0x3d0] sm:$0xff] %vm133_vm0, %v130_v58  ;;  %257 = vst.msk [vmem:[%s1149_s1 + $0x3d8] sm:$0xff] %vm133_vm0, %v131_v59 }
  0x40   :  { %258 = vst.msk [vmem:[%s1149_s1 + $0x3e0] sm:$0xff] %vm133_vm0, %v132_v60 }

</bundles_post_ra>
